<compile_context>
chip_gen: v5e
topology: v5e:2x2
jax: 0.10.0
libtpu: 0.0.40
codegen_flags: <defaults>
</compile_context>

<pallas_src>
import functools
import math

import jax
import jax.numpy as jnp
from jax import lax
from jax.experimental import pallas as pl
from jax.experimental.pallas import tpu as pltpu

_INV_SQRT2 = 1.0 / math.sqrt(2.0)


def _geglu_kernel(x_ref, wh_ref, wg_ref, bh_ref, bg_ref, o_ref, acc_h, acc_g):
    # x_ref:  (tm, tk)   native x dtype; cast per-tile to the weight dtype for the MXU
    # wh_ref: (tk, tn)   "hidden"-half weight tile (compute dtype, bf16 by default)
    # wg_ref: (tk, tn)   "gate"-half weight tile
    # bh_ref, bg_ref: (1, tn) f32
    # o_ref:  (tm, tn)   x dtype
    # acc_h, acc_g: (tm, tn) f32 accumulators, resident across the K axis
    k = pl.program_id(2)

    @pl.when(k == 0)
    def _():
        acc_h[...] = jnp.zeros_like(acc_h)
        acc_g[...] = jnp.zeros_like(acc_g)

    x = x_ref[...].astype(wh_ref.dtype)      # bf16 MXU feed even for f32 models
    acc_h[...] += jnp.dot(x, wh_ref[...], preferred_element_type=jnp.float32)
    acc_g[...] += jnp.dot(x, wg_ref[...], preferred_element_type=jnp.float32)

    @pl.when(k == pl.num_programs(2) - 1)
    def _():
        h = acc_h[...] + bh_ref[...]
        g = acc_g[...] + bg_ref[...]
        # Exact GELU (matches torch.nn.functional.gelu default, approximate='none').
        gelu_g = 0.5 * g * (1.0 + lax.erf(g * jnp.float32(_INV_SQRT2)))
        o_ref[...] = (h * gelu_g).astype(o_ref.dtype)


def _round_up(x, m):
    return ((x + m - 1) // m) * m


def _sublane_min(dtype):
    # min second-minor tile: f32 -> 8, bf16 -> 16, int8/fp8 -> 32
    return {4: 8, 2: 16, 1: 32}.get(jnp.dtype(dtype).itemsize, 8)


def _pick_divisor_tile(total, target, multiple):
    """Largest divisor of `total` that is <= target and a multiple of `multiple`,
    falling back to the full dimension (always a legal block)."""
    if total <= target or total % multiple != 0:
        return total
    t = (target // multiple) * multiple
    while t >= multiple:
        if total % t == 0:
            return t
        t -= multiple
    return total


def _vmem_capacity_bytes():
    """Physical VMEM per TensorCore; conservative 64 MiB (v7x) when unknown."""
    try:
        cap = getattr(pltpu.get_tpu_info(), "vmem_capacity_bytes", None)
        if cap:
            return int(cap)
    except Exception:
        pass
    return 64 << 20


def _plan_bytes(tm, tn, tk, x_isz, w_isz, o_isz):
    """Double-buffered VMEM footprint of one grid step (+ resident f32 accumulators)."""
    db = 2
    return (db * tm * tk * x_isz          # x tile
            + db * 2 * tk * tn * w_isz    # W_h + W_g tiles
            + db * 2 * tn * 4             # biases
            + db * tm * tn * o_isz        # output tile
            + 2 * tm * tn * 4)            # accumulators (single-buffered scratch)


def prepare_geglu_params(weight, bias, compute_dtype=jnp.bfloat16):
    """One-time weight prep (outside the hot path).

    weight: (2*dim_out, dim_in)  PyTorch nn.Linear layout
    bias:   (2*dim_out,)
    Returns w_h, w_g as (dim_in, dim_out) in compute_dtype (bf16 default so the
    MXU is fed bf16 even for f32 checkpoints); b_h, b_g as (1, dim_out) f32.
    """
    two_dout, _ = weight.shape
    dim_out = two_dout // 2
    w_h = jnp.asarray(weight[:dim_out, :].T, dtype=compute_dtype)
    w_g = jnp.asarray(weight[dim_out:, :].T, dtype=compute_dtype)
    b_h = jnp.asarray(bias[:dim_out], dtype=jnp.float32).reshape(1, dim_out)
    b_g = jnp.asarray(bias[dim_out:], dtype=jnp.float32).reshape(1, dim_out)
    return w_h, w_g, b_h, b_g


@functools.partial(jax.jit, static_argnames=("tm", "tn", "tk"))
def geglu_apply(x, w_h, w_g, b_h, b_g, *, tm=1024, tn=512, tk=2048):
    """GEGLU forward with pre-split weights.

    x: (batch, seq, dim_in); w_h/w_g: (dim_in, dim_out); b_h/b_g: (1, dim_out)
    Returns (batch, seq, dim_out) in x.dtype.
    """
    B, S, dim_in = x.shape
    dim_in_w, dim_out = w_h.shape
    assert dim_in_w == dim_in

    M = B * S
    x2d = x.reshape(M, dim_in)

    x_isz = jnp.dtype(x.dtype).itemsize
    w_isz = jnp.dtype(w_h.dtype).itemsize
    sub = _sublane_min(x.dtype)

    # ---- tile selection -----------------------------------------------------
    # Row tile: sublane-aligned; M axis is ragged (no padding pass).
    tm_eff = _round_up(min(tm, _round_up(M, sub)), sub)
    # Output-feature tile: lane-dense multiple of 128 (ragged last block) or full dim.
    if dim_out <= tn or dim_out < 128:
        tn_eff = dim_out
    else:
        tn_eff = max(128, (min(tn, dim_out) // 128) * 128)
    # Reduction tile: must exactly divide dim_in (no junk in the accumulation),
    # multiple of 128, else the full dim.
    tk_eff = _pick_divisor_tile(dim_in, tk, 128)

    # ---- generation-aware VMEM budget ---------------------------------------
    vmem_cap = _vmem_capacity_bytes()
    budget = int(vmem_cap * 0.7)
    for _ in range(64):
        if _plan_bytes(tm_eff, tn_eff, tk_eff, x_isz, w_isz, x_isz) <= budget:
            break
        new_tk = _pick_divisor_tile(dim_in, max(128, tk_eff // 2), 128)
        if new_tk < tk_eff:                       # split the reduction axis first
            tk_eff = new_tk
        elif tm_eff > sub:
            tm_eff = max(sub, _round_up(tm_eff // 2, sub))
        elif tn_eff >= 256:
            tn_eff = max(128, (tn_eff // 2) // 128 * 128)
        else:
            break

    grid_m = pl.cdiv(M, tm_eff)
    grid_n = pl.cdiv(dim_out, tn_eff)
    grid_k = pl.cdiv(dim_in, tk_eff)

    # v7x megacore balance: keep at least one parallel axis with extent >= 2.
    if grid_m == 1 and grid_n == 1 and M >= 2 * sub:
        tm_eff = _round_up(pl.cdiv(M, 2), sub)
        grid_m = pl.cdiv(M, tm_eff)

    needed = _plan_bytes(tm_eff, tn_eff, tk_eff, x_isz, w_isz, x_isz)
    vmem_limit = int(min(vmem_cap, max(needed + (8 << 20), 16 << 20)))

    # Streaming-aware cost hint: weights re-read grid_m times; x re-read grid_n
    # times only when the K axis is actually split.
    x_passes = 1 if grid_k == 1 else grid_n
    cost = pl.CostEstimate(
        flops=2 * M * dim_in * 2 * dim_out,
        transcendentals=M * dim_out,
        bytes_accessed=int(x_passes * M * dim_in * x_isz
                           + grid_m * 2 * dim_in * dim_out * w_isz
                           + 2 * dim_out * 4
                           + M * dim_out * x_isz),
    )

    out2d = pl.pallas_call(
        _geglu_kernel,
        out_shape=jax.ShapeDtypeStruct((M, dim_out), x.dtype),
        grid_spec=pltpu.PrefetchScalarGridSpec(
            num_scalar_prefetch=0,
            grid=(grid_m, grid_n, grid_k),
            in_specs=[
                pl.BlockSpec((tm_eff, tk_eff), lambda i, j, k: (i, k)),   # x rows
                pl.BlockSpec((tk_eff, tn_eff), lambda i, j, k: (k, j)),   # W_h tile
                pl.BlockSpec((tk_eff, tn_eff), lambda i, j, k: (k, j)),   # W_g tile
                pl.BlockSpec((1, tn_eff), lambda i, j, k: (0, j)),        # b_h
                pl.BlockSpec((1, tn_eff), lambda i, j, k: (0, j)),        # b_g
            ],
            out_specs=pl.BlockSpec((tm_eff, tn_eff), lambda i, j, k: (i, j)),
            scratch_shapes=[pltpu.VMEM((tm_eff, tn_eff), jnp.float32),
                            pltpu.VMEM((tm_eff, tn_eff), jnp.float32)],
        ),
        compiler_params=pltpu.CompilerParams(
            dimension_semantics=("parallel", "parallel", "arbitrary"),
            vmem_limit_bytes=vmem_limit),
        cost_estimate=cost,
    )(x2d, w_h, w_g, b_h, b_g)

    return out2d.reshape(B, S, dim_out)


def geglu(x, weight, bias, *, compute_dtype=jnp.bfloat16, tm=1024, tn=512, tk=2048):
    """Convenience wrapper taking the raw PyTorch-layout weight/bias."""
    w_h, w_g, b_h, b_g = prepare_geglu_params(weight, bias, compute_dtype)
    return geglu_apply(x, w_h, w_g, b_h, b_g, tm=tm, tn=tn, tk=tk)


def geglu_reference(x, weight, bias):
    """Pure-JAX reference matching the PyTorch module (f32 math)."""
    xf = x.astype(jnp.float32)
    wf = weight.astype(jnp.float32)
    bf = bias.astype(jnp.float32)
    proj = jnp.einsum("bsd,od->bso", xf, wf) + bf
    dim_out = weight.shape[0] // 2
    h, g = proj[..., :dim_out], proj[..., dim_out:]
    return h * jax.nn.gelu(g, approximate=False)


if __name__ == "__main__":
    key = jax.random.PRNGKey(0)

    # --- Test 1: small f32 case, exact f32 MXU feed (tight tolerance) -------
    B, S, dim_in, dim_out = 2, 8, 32, 32
    k1, k2, k3, key = jax.random.split(key, 4)
    bound = 1.0 / math.sqrt(dim_in)
    x = jax.random.normal(k1, (B, S, dim_in), dtype=jnp.float32)
    weight = jax.random.uniform(k2, (2 * dim_out, dim_in),
                                minval=-bound, maxval=bound, dtype=jnp.float32)
    bias = jax.random.uniform(k3, (2 * dim_out,),
                              minval=-bound, maxval=bound, dtype=jnp.float32)

    out = jax.block_until_ready(geglu(x, weight, bias, compute_dtype=jnp.float32))
    ref = geglu_reference(x, weight, bias)
    assert out.shape == (B, S, dim_out)
    assert jnp.allclose(out, ref, atol=1e-4, rtol=1e-4), "f32 mismatch vs reference"

    # --- Test 2: ragged M, ragged N, split K, default bf16 MXU feed ---------
    # M=240 -> grid_m=2 (ragged), dim_out=384 w/ tn=256 -> grid_n=2 (ragged),
    # dim_in=256 w/ tk=128 -> grid_k=2 (accumulator path).
    B2, S2, din2, dout2 = 2, 120, 256, 384
    k1, k2, k3, key = jax.random.split(key, 4)
    bound2 = 1.0 / math.sqrt(din2)
    x2 = jax.random.normal(k1, (B2, S2, din2), dtype=jnp.float32)
    w2 = jax.random.uniform(k2, (2 * dout2, din2),
                            minval=-bound2, maxval=bound2, dtype=jnp.float32)
    b2 = jax.random.uniform(k3, (2 * dout2,),
                            minval=-bound2, maxval=bound2, dtype=jnp.float32)

    out2 = jax.block_until_ready(geglu(x2, w2, b2, tm=128, tn=256, tk=128))
    ref2 = geglu_reference(x2, w2, b2)
    assert out2.shape == (B2, S2, dout2)
    assert jnp.allclose(out2, ref2, atol=2e-2, rtol=2e-2), "tiled/ragged mismatch"

    # --- Test 3: bf16 end-to-end ---------------------------------------------
    xb = x.astype(jnp.bfloat16)
    wb = weight.astype(jnp.bfloat16)
    bb = bias.astype(jnp.bfloat16)
    outb = jax.block_until_ready(geglu(xb, wb, bb))
    refb = geglu_reference(xb, wb, bb)
    assert jnp.allclose(outb.astype(jnp.float32), refb, atol=5e-2, rtol=5e-2), \
        "bf16 mismatch vs reference"

    print("KERNEL_OK")
</pallas_src>

<mosaic_0001>
module attributes {stable_mosaic.version = 11 : i64} {
  func.func @_geglu_kernel(%arg0: i32, %arg1: i32, %arg2: i32, %arg3: memref<8x32xf32, #tpu.memory_space<vmem>>, %arg4: memref<32x32xf32, #tpu.memory_space<vmem>>, %arg5: memref<32x32xf32, #tpu.memory_space<vmem>>, %arg6: memref<1x32xf32, #tpu.memory_space<vmem>>, %arg7: memref<1x32xf32, #tpu.memory_space<vmem>>, %arg8: memref<8x32xf32, #tpu.memory_space<vmem>>, %arg9: memref<8x32xf32, #tpu.memory_space<vmem>>, %arg10: memref<8x32xf32, #tpu.memory_space<vmem>>) attributes {dimension_semantics = [#tpu.dimension_semantics<parallel>, #tpu.dimension_semantics<parallel>, #tpu.dimension_semantics<arbitrary>], iteration_bounds = array<i64: 2, 1, 1>, scalar_prefetch = 0 : i64, scratch_operands = 2 : i64, tpu.core_type = #tpu.core_type<tc>, window_params = [{transform_indices = @transform_0, window_bounds = array<i64: 8, 32>}, {transform_indices = @transform_1, window_bounds = array<i64: 32, 32>}, {transform_indices = @transform_2, window_bounds = array<i64: 32, 32>}, {transform_indices = @transform_3, window_bounds = array<i64: 1, 32>}, {transform_indices = @transform_4, window_bounds = array<i64: 1, 32>}, {transform_indices = @transform_5, window_bounds = array<i64: 8, 32>}]} {
    %c0_i32 = arith.constant 0 : i32
    %0 = arith.cmpi eq, %arg2, %c0_i32 : i32
    %1 = arith.extui %0 : i1 to i32
    %c0_i32_0 = arith.constant 0 : i32
    %2 = arith.cmpi ne, %1, %c0_i32_0 : i32
    scf.if %2 {
      %cst_17 = arith.constant 0.000000e+00 : f32
      %17 = vector.broadcast %cst_17 : f32 to vector<8x32xf32>
      %c0_18 = arith.constant 0 : index
      %c0_19 = arith.constant 0 : index
      %18 = vector.load %arg9[%c0_18, %c0_19] : memref<8x32xf32, #tpu.memory_space<vmem>>, vector<8x32xf32>
      tpu.vector_store %arg9[%c0_18, %c0_19], %17 {strides = array<i32>} : memref<8x32xf32, #tpu.memory_space<vmem>>, vector<8x32xf32>,
      %cst_20 = arith.constant 0.000000e+00 : f32
      %19 = vector.broadcast %cst_20 : f32 to vector<8x32xf32>
      %c0_21 = arith.constant 0 : index
      %c0_22 = arith.constant 0 : index
      %20 = vector.load %arg10[%c0_21, %c0_22] : memref<8x32xf32, #tpu.memory_space<vmem>>, vector<8x32xf32>
      tpu.vector_store %arg10[%c0_21, %c0_22], %19 {strides = array<i32>} : memref<8x32xf32, #tpu.memory_space<vmem>>, vector<8x32xf32>,
    } else {
    }
    %c0 = arith.constant 0 : index
    %c0_1 = arith.constant 0 : index
    %3 = vector.load %arg3[%c0, %c0_1] : memref<8x32xf32, #tpu.memory_space<vmem>>, vector<8x32xf32>
    %c0_2 = arith.constant 0 : index
    %c0_3 = arith.constant 0 : index
    %4 = vector.load %arg9[%c0_2, %c0_3] : memref<8x32xf32, #tpu.memory_space<vmem>>, vector<8x32xf32>
    %c0_4 = arith.constant 0 : index
    %c0_5 = arith.constant 0 : index
    %5 = vector.load %arg4[%c0_4, %c0_5] : memref<32x32xf32, #tpu.memory_space<vmem>>, vector<32x32xf32>
    %cst = arith.constant dense<0.000000e+00> : vector<8x32xf32>
    %6 = tpu.matmul %3, %5, %cst {dimension_numbers = #tpu.dot_dimension_numbers<[1], [0], [0], [1], [0, 0, 1, 1], [], []>} : vector<8x32xf32>, vector<32x32xf32>, vector<8x32xf32> -> vector<8x32xf32>
    %7 = arith.addf %4, %6 : vector<8x32xf32>
    %c0_6 = arith.constant 0 : index
    %c0_7 = arith.constant 0 : index
    %8 = vector.load %arg9[%c0_6, %c0_7] : memref<8x32xf32, #tpu.memory_space<vmem>>, vector<8x32xf32>
    tpu.vector_store %arg9[%c0_6, %c0_7], %7 {strides = array<i32>} : memref<8x32xf32, #tpu.memory_space<vmem>>, vector<8x32xf32>,
    %c0_8 = arith.constant 0 : index
    %c0_9 = arith.constant 0 : index
    %9 = vector.load %arg10[%c0_8, %c0_9] : memref<8x32xf32, #tpu.memory_space<vmem>>, vector<8x32xf32>
    %c0_10 = arith.constant 0 : index
    %c0_11 = arith.constant 0 : index
    %10 = vector.load %arg5[%c0_10, %c0_11] : memref<32x32xf32, #tpu.memory_space<vmem>>, vector<32x32xf32>
    %cst_12 = arith.constant dense<0.000000e+00> : vector<8x32xf32>
    %11 = tpu.matmul %3, %10, %cst_12 {dimension_numbers = #tpu.dot_dimension_numbers<[1], [0], [0], [1], [0, 0, 1, 1], [], []>} : vector<8x32xf32>, vector<32x32xf32>, vector<8x32xf32> -> vector<8x32xf32>
    %12 = arith.addf %9, %11 : vector<8x32xf32>
    %c0_13 = arith.constant 0 : index
    %c0_14 = arith.constant 0 : index
    %13 = vector.load %arg10[%c0_13, %c0_14] : memref<8x32xf32, #tpu.memory_space<vmem>>, vector<8x32xf32>
    tpu.vector_store %arg10[%c0_13, %c0_14], %12 {strides = array<i32>} : memref<8x32xf32, #tpu.memory_space<vmem>>, vector<8x32xf32>,
    %c0_i32_15 = arith.constant 0 : i32
    %14 = arith.cmpi eq, %arg2, %c0_i32_15 : i32
    %15 = arith.extui %14 : i1 to i32
    %c0_i32_16 = arith.constant 0 : i32
    %16 = arith.cmpi ne, %15, %c0_i32_16 : i32
    scf.if %16 {
      %c0_17 = arith.constant 0 : index
      %c0_18 = arith.constant 0 : index
      %17 = vector.load %arg9[%c0_17, %c0_18] : memref<8x32xf32, #tpu.memory_space<vmem>>, vector<8x32xf32>
      %c0_19 = arith.constant 0 : index
      %c0_20 = arith.constant 0 : index
      %18 = vector.load %arg6[%c0_19, %c0_20] : memref<1x32xf32, #tpu.memory_space<vmem>>, vector<1x32xf32>
      %19 = vector.broadcast %18 : vector<1x32xf32> to vector<8x32xf32>
      %20 = arith.addf %17, %19 : vector<8x32xf32>
      %c0_21 = arith.constant 0 : index
      %c0_22 = arith.constant 0 : index
      %21 = vector.load %arg10[%c0_21, %c0_22] : memref<8x32xf32, #tpu.memory_space<vmem>>, vector<8x32xf32>
      %c0_23 = arith.constant 0 : index
      %c0_24 = arith.constant 0 : index
      %22 = vector.load %arg7[%c0_23, %c0_24] : memref<1x32xf32, #tpu.memory_space<vmem>>, vector<1x32xf32>
      %23 = vector.broadcast %22 : vector<1x32xf32> to vector<8x32xf32>
      %24 = arith.addf %21, %23 : vector<8x32xf32>
      %cst_25 = arith.constant 5.000000e-01 : f32
      %25 = vector.broadcast %cst_25 : f32 to vector<8x32xf32>
      %26 = arith.mulf %25, %24 : vector<8x32xf32>
      %cst_26 = arith.constant 0.707106769 : f32
      %27 = vector.broadcast %cst_26 : f32 to vector<8x32xf32>
      %28 = arith.mulf %24, %27 : vector<8x32xf32>
      %29 = math.erf %28 : vector<8x32xf32>
      %cst_27 = arith.constant 1.000000e+00 : f32
      %30 = vector.broadcast %cst_27 : f32 to vector<8x32xf32>
      %31 = arith.addf %30, %29 : vector<8x32xf32>
      %32 = arith.mulf %26, %31 : vector<8x32xf32>
      %33 = arith.mulf %20, %32 : vector<8x32xf32>
      %c0_28 = arith.constant 0 : index
      %c0_29 = arith.constant 0 : index
      %34 = vector.load %arg8[%c0_28, %c0_29] : memref<8x32xf32, #tpu.memory_space<vmem>>, vector<8x32xf32>
      tpu.vector_store %arg8[%c0_28, %c0_29], %33 {strides = array<i32>} : memref<8x32xf32, #tpu.memory_space<vmem>>, vector<8x32xf32>,
    } else {
    }
    return
  }
  func.func @transform_0(%arg0: i32, %arg1: i32, %arg2: i32) -> (i32, i32) {
    %c0_i32 = arith.constant 0 : i32
    return %arg0, %arg2 : i32, i32
  }
  func.func @transform_1(%arg0: i32, %arg1: i32, %arg2: i32) -> (i32, i32) {
    %c0_i32 = arith.constant 0 : i32
    return %arg2, %arg1 : i32, i32
  }
  func.func @transform_2(%arg0: i32, %arg1: i32, %arg2: i32) -> (i32, i32) {
    %c0_i32 = arith.constant 0 : i32
    return %arg2, %arg1 : i32, i32
  }
  func.func @transform_3(%arg0: i32, %arg1: i32, %arg2: i32) -> (i32, i32) {
    %c0_i32 = arith.constant 0 : i32
    %c0_i32_0 = arith.constant 0 : i32
    return %c0_i32, %arg1 : i32, i32
  }
  func.func @transform_4(%arg0: i32, %arg1: i32, %arg2: i32) -> (i32, i32) {
    %c0_i32 = arith.constant 0 : i32
    %c0_i32_0 = arith.constant 0 : i32
    return %c0_i32, %arg1 : i32, i32
  }
  func.func @transform_5(%arg0: i32, %arg1: i32, %arg2: i32) -> (i32, i32) {
    %c0_i32 = arith.constant 0 : i32
    return %arg0, %arg1 : i32, i32
  }
}

</mosaic_0001>

<bundles_post_ra>
// kernel: geglu_apply.1
= control target key start
LH: loop header
LB: loop body
LE: loop exit
PB: predicated region body
PF: predicated region fallthrough
CT: control target
= control target key end

     0   :  { %10 = vsyncpa [#allocation5], 0  ;;  %s1115_s0 = inlined_call_operand.hbm [shape: f32[16,32], index: 0, kind: input, shape index: {}]   ;;  %s1116_s1 = inlined_call_operand.hbm [shape: f32[32,32], index: 1, kind: input, shape index: {}]   ;;  %s1117_s2 = inlined_call_operand.hbm [shape: f32[32,32], index: 2, kind: input, shape index: {}]   ;;  %s1118_s3 = inlined_call_operand.vmem [shape: f32[1,32], index: 3, kind: input, shape index: {}]   ;;  %s1119_s4 = inlined_call_operand.vmem [shape: f32[1,32], index: 4, kind: input, shape index: {}]   ;;  %s1120_s5 = inlined_call_operand.hbm [shape: f32[16,32], index: 5, kind: output, shape index: {}]  }
   0x1   :  { %12 = vsyncpa [#allocation5 + $0x1], 0 }
   0x2   :  { %13 = vsyncpa [#allocation8], 0 }
   0x3   :  { %14 = vsyncpa [#allocation6], 0 }
   0x4   :  { %16 = vsyncpa [#allocation6 + $0x1], 0  ;;  %s954_s18 = smov 0   ;;  %s956_s19 = smov 0  }
   0x5   :  { %s958_s20 = smov 0   ;;  %s960_s21 = smov 0  }
   0x6   :  { %s962_s22 = smov 0   ;;  %s964_s23 = smov 0  }
   0x7 LB: > { %s629_s24 = sadd.s32 4294967295, %s917_s23   ;;  %p631_p0 = scmp.ge.s32.totalorder %s917_s23, 1  ;;  %s917_s23 = sphi %s964_s23, %s22_s23   ;;  %s913_s22 = sphi %s962_s22, %s1130_s22   ;;  %s909_s21 = sphi %s960_s21, %s1129_s21   ;;  %s905_s20 = sphi %s958_s20, %s1128_s20   ;;  %s901_s19 = sphi %s956_s19, %s1127_s19   ;;  %s897_s18 = sphi %s954_s18, %s1126_s18  }
   0x8   : > { %p988_p1 = scmp.eq.s32.totalorder %s629_s24, 0  ;;  %p210_p2 = scmp.lt.s32.totalorder %s917_s23, 3 }
   0x9   : > { %s225_s28 = sshll.u32 %s1116_s1, 4  ;;  %s919_s30 = smov [#allocation7]   ;;  %s226_s28 = int_to_ptr.hbm [resolvable:$true] %s225_s28 }
   0xa   : > { %p996_p3 = pnand %p631_p0, %p210_p2  ;;  %s227_s6 = sshll.u32 %s919_s30, 4  ;;  %s228_s6 = int_to_ptr.vmem [resolvable:$true] %s227_s6 }
   0xb   : > { %p636_p6 = scmp.ge.s32.totalorder %s917_s23, 2  ;;  %s243_s9 = sshll.u32 %s1117_s2, 4  ;;  %s244_s9 = int_to_ptr.hbm [resolvable:$true] %s243_s9 }
   0xc   : > { %p663_p4 = pneg %p996_p3  ;;  %s920_s10 = smov 128  }
   0xd   : > { %s921_s11 = smov 8   ;;  %s922_s12 = smov [#allocation9]  }
   0xe   : > { %p664_p5 = pnand %p663_p4, %p988_p1  ;;  %s245_s13 = sshll.u32 %s922_s12, 4  ;;  %s246_s13 = int_to_ptr.vmem [resolvable:$true] %s245_s13 }
   0xf   : > { %s41_s14 = sadd.s32 1, %s913_s22  ;;  %s630_s15 = sadd.s32 4294967294, %s917_s23  }
  0x10   : > { %666 = dma.hbm_to_vmem [thread:$0]  (!%p664_p5), %s226_s28, 512, %s228_s6, [#allocation8], %s920_s10, %s920_s10, %s921_s11  }
  0x11   : > { %669 = dma.hbm_to_vmem [thread:$0]  (!%p664_p5), %s244_s9, 512, %s246_s13, [#allocation8], %s920_s10, %s920_s10, %s921_s11  }
  0x12   : > { %p43_p7 = scmp.ge.s32.totalorder %s41_s14, 2  ;;  %s50_s16 = sadd.s32 1, %s905_s20 }
  0x13   : > { %p57_p8 = scmp.ne.s32.totalorder %s905_s20, %s901_s19  ;;  %p58_p9 = scmp.eq.s32.totalorder %s917_s23, 0 }
  0x14   : > { %s1132_s14 = smov (%p43_p7, %s41_s14), 0  ;;  %p63_p10 = scmp.ne.s32.totalorder %s901_s19, %s897_s18 }
  0x15   : > { %s45_s17 = ssub.s32 %s913_s22, %s1132_s14  ;;  %p197_p11 = scmp.eq.s32.totalorder %s629_s24, 1 }
  0x16   : > { %p48_p12 = scmp.eq.s32.totalorder %s45_s17, 0  ;;  %p1024_p13 = por %p988_p1, %p63_p10 }
  0x17   : > { %p1028_p0 = por %p197_p11, %p57_p8  ;;  %p203_p2 = scmp.eq.s32.totalorder %s630_s15, 1 }
  0x18   : > { %s1033_s28 = scalar_select %p48_p12, %s905_s20, %s50_s16  }
  0x19   : > { %p59_p4 = por %p58_p9, %p57_p8  ;;  %p1035_p5 = por %p203_p2, %p63_p10 }
  0x1a   : > { %s271_s6 = sand.u32 1, %s905_s20   ;;  %s638_s24 = sshll.u32 %s913_s22, 3 }
  0x1b   : > { %p680_p7 = scmp.lt.s32.totalorder %s917_s23, 2  ;;  %s637_s7 = sshll.u32 %s271_s6, 3 }
  0x1c   : > { %s280_s10 = scalar_lea.hbm %s1115_s0, %s638_s24  ;;  %s275_s12 = scalar_lea.vmem [#allocation4], %s637_s7 }
  0x1d   : > { %s282_s11 = sshll.u32 %s280_s10, 4  ;;  %s284_s13 = sshll.u32 %s275_s12, 4  ;;  %s283_s11 = int_to_ptr.hbm [resolvable:$true] %s282_s11  ;;  %s285_s13 = int_to_ptr.vmem [resolvable:$true] %s284_s13 }
  0x1e   : > { %p671_p11 = pnand %p680_p7, %p59_p4  ;;  %s272_s15 = scalar_lea.sflag [#allocation5], %s271_s6 }
  0x1f   : > { %293 = sbr.rel (%p996_p3) target bundleno = 241 (0xf1), region = 40  ;;  %s1048_s16 = sand.u32 (!%p996_p3), 1, %s901_s19  }
  0x20   : > { %673 = dma.hbm_to_vmem [thread:$0]  (!%p671_p11), %s283_s11, 128, %s285_s13, %s272_s15  }
  0x21   : > { %s640_s17 = sshll.u32 (!%p996_p3), %s1048_s16, 3  ;;  %s296_s24 = scalar_lea.sflag (!%p996_p3), [#allocation5], %s1048_s16 }
  0x22   : > { %s299_s7 = scalar_lea.vmem (!%p996_p3), [#allocation4], %s640_s17 }
  0x24   : > { %884 = dma.done.wait (%p1024_p13), %s296_s24, 128  }
  0x25   : > { %886 = vsyncadd (%p1024_p13), %s296_s24, 4294967168 }
  0x26   : > { %888 = dma.done.wait (%p988_p1), [#allocation8], 1024  }
  0x27   : > { %890 = vsyncadd (%p988_p1), [#allocation8], 4294966272  ;;  %vm355_vm0 = vcmask 261120   ;;  %v923_v0 = vmov 0.0   ;;  %v394_v1 = vld [vmem:[#allocation9 + $0x18] sm:$0xff]  ;;  %v393_v2 = vld [vmem:[#allocation9 + $0x10] sm:$0xff] }
  0x28   : > { %357 = vst.msk [vmem:[#allocation3] sm:$0xff] %vm355_vm0, %v923_v0  ;;  %407 = vmatpush.msra.mxu1 %v394_v1  ;;  %v363_v3 = vld [vmem:[#allocation7 + $0x18] sm:$0xff]  ;;  %v392_v4 = vld [vmem:[#allocation9 + $0x8] sm:$0xff]  ;;  %v362_v5 = vld [vmem:[#allocation7 + $0x10] sm:$0xff]  ;;  %s648_s26 = sshll.u32 %s909_s21, 3  ;;  %s342_s12 = scalar_lea.vmem [#allocation10], %s640_s17 }
  0x29   : > { %356 = vst.msk [vmem:[#allocation2] sm:$0xff] %vm355_vm0, %v923_v0  ;;  %380 = vmatpush.msra.mxu0 %v363_v3  ;;  %v361_v6 = vld [vmem:[#allocation7 + $0x8] sm:$0xff]  ;;  %v391_v7 = vld [vmem:[#allocation9] sm:$0xff]  ;;  %v358_v8 = vld [vmem:[%s299_s7] sm:$0xff]  ;;  %s490_s11 = scalar_lea.hbm %s1120_s5, %s648_s26  ;;  %s492_s13 = sshll.u32 %s342_s12, 4  ;;  %s493_s13 = int_to_ptr.vmem [resolvable:$true] %s492_s13 }
  0x2a   : > { %408 = vmatpush.msra.mxu1 %v393_v2  ;;  %v360_v9 = vld [vmem:[#allocation7] sm:$0xff]  ;;  %s494_s21 = sshll.u32 %s490_s11, 4  ;;  %s479_s15 = scalar_lea.sflag [#allocation6], %s1048_s16  ;;  %s495_s21 = int_to_ptr.hbm [resolvable:$true] %s494_s21 }
  0x2b   : > { %381 = vmatpush.msra.mxu0 %v362_v5  ;;  %v738_v16 = vld [vmem:[%s1119_s4] ss:$0 sm:$0xff]  ;;  %s845_s24 = sshra.s32 %s495_s21, 4  ;;  %s851_s17 = scalar_lea.hbm %s1120_s5, 16  ;;  %s846_s24 = int_to_ptr.hbm [resolvable:$true] %s845_s24 }
  0x2c   : > { %409 = vmatpush.msra.mxu1 %v392_v4  ;;  %v737_v53 = vld [vmem:[%s1118_s3] ss:$0 sm:$0xff]  ;;  %s847_s7 = scalar_lea.hbm %s846_s24, 8  ;;  %p852_p9 = scmp.lt.s32.totalorder %s846_s24, %s1120_s5 }
  0x2d   : > { %382 = vmatpush.msra.mxu0 %v361_v6  ;;  %p848_p1 = scmp.ne.s32.totalorder %s846_s24, %s847_s7  ;;  %p853_p10 = scmp.lt.s32.totalorder %s851_s17, %s847_s7 }
  0x2e   : > { %410 = vmatpush.msra.mxu1 %v391_v7 }
  0x2f   : > { %645 = vmatmul.msk.f32.vlgmr.msra.gmra.mxu1 %vm355_vm0, %v358_v8  ;;  %383 = vmatpush.msra.mxu0 %v360_v9  ;;  %v390_v10 = vld [vmem:[#allocation3] sm:$0xff]  ;;  %p849_p3 = pnand %p848_p1, %p1028_p0  ;;  %p854_p12 = por %p853_p10, %p852_p9 }
  0x30   : > { %644 = vmatmul.msk.f32.vlgmr.msra.gmra.mxu0 %vm355_vm0, %v358_v8  ;;  %v359_v11 = vld [vmem:[#allocation2] sm:$0xff] }
  0x31   : > { %p850_p8 = pneg %p849_p3 }
  0x33   : > { %p855_p13 = pnand %p854_p12, %p850_p8 }
  0xac   : > { %v412_v12 = vpop.f32.mrf.mxu1 }
  0xad   : > { %v415_v13 = vadd.f32 %v412_v12, %v390_v10  ;;  %v385_v14 = vpop.f32.mrf.mxu0 }
  0xae   : > { %v388_v15 = vadd.f32 %v385_v14, %v359_v11 }
  0xaf   : > { %416 = vst.msk [vmem:[#allocation3] sm:$0xff] %vm355_vm0, %v415_v13 }
  0xb0   : > { %389 = vst.msk [vmem:[#allocation2] sm:$0xff] %vm355_vm0, %v388_v15 }
  0xb6   : > { %v426_v17 = vld [vmem:[#allocation3] sm:$0xff] }
  0xb7   : > { %v431_v18 = vadd.f32 %v738_v16, %v426_v17  ;;  %v420_v55 = vld [vmem:[#allocation2] sm:$0xff] }
  0xb8   : > { %v425_v57 = vadd.f32 %v737_v53, %v420_v55 }
  0xb9   : > { %v433_v19 = vmul.f32 0.70710677, %v431_v18  ;;  %v432_v58 = vmul.f32 0.5, %v431_v18 }
  0xbb   : > { %v434_v20 = vmul.f32 %v433_v19, %v433_v19 }
  0xbd   : > { %v435_v21 = vmin.f32 %v434_v20, 16.0 }
  0xbf   : > { %v436_v22 = vmul.f32 2.1237322e-06, %v435_v21  ;;  %v447_v23 = vmul.f32 3.8918573e-05, %v435_v21 }
  0xc1   : > { %v437_v24 = vadd.f32 0.00028619796, %v436_v22  ;;  %v448_v25 = vadd.f32 0.001143296, %v447_v23 }
  0xc3   : > { %v438_v26 = vmul.f32 %v437_v24, %v435_v21  ;;  %v449_v27 = vmul.f32 %v448_v25, %v435_v21 }
  0xc5   : > { %v450_v28 = vadd.f32 0.014752088, %v449_v27  ;;  %v439_v29 = vadd.f32 0.0036580483, %v438_v26 }
  0xc7   : > { %v451_v30 = vmul.f32 %v450_v28, %v435_v21  ;;  %v440_v32 = vmul.f32 %v439_v29, %v435_v21 }
  0xc9   : > { %v452_v31 = vadd.f32 0.112945676, %v451_v30  ;;  %v441_v35 = vadd.f32 0.05243302, %v440_v32 }
  0xcb   : > { %v453_v33 = vmul.f32 %v452_v31, %v435_v21  ;;  %v442_v38 = vmul.f32 %v441_v35, %v435_v21 }
  0xcd   : > { %v454_v34 = vadd.f32 0.4994258, %v453_v33  ;;  %v443_v39 = vadd.f32 0.18741608, %v442_v38 }
  0xcf   : > { %v455_v36 = vmul.f32 %v454_v34, %v435_v21  ;;  %v444_v41 = vmul.f32 %v443_v39, %v435_v21 }
  0xd1   : > { %v456_v37 = vadd.f32 1.0, %v455_v36  ;;  %v445_v45 = vadd.f32 1.1283791, %v444_v41 }
  0xd3   : > { %739 = vrcp.f32 %v456_v37  ;;  %v468_v44 = vand.u32 2147483648, %v456_v37  ;;  %v466_v47 = vand.u32 2147483647, %v456_v37  ;;  %vm462_vm2 = vweird.f32 %v456_v37 }
  0xd4   : > { %v446_v50 = vmul.f32 %v445_v45, %v433_v19 }
  0xd5   : > { %v469_v49 = vor.u32 1.1754944e-38, %v468_v44  ;;  %vm467_vm4 = vcmp.eq.f32.partialorder %v466_v47, 8.507059e+37 }
  0xd9   : > { %v740_v40 = vpop.eup %739 }
  0xda   : > { %v458_v42 = vmul.f32 %v740_v40, %v456_v37  ;;  %vm463_vm1 = vweird.f32 %v740_v40 }
  0xdb   : > { %vm464_vm3 = vmor %vm462_vm2, %vm463_vm1 }
  0xdc   : > { %v459_v43 = vsub.f32 1.0, %v458_v42 }
  0xde   : > { %v460_v46 = vmul.f32 %v740_v40, %v459_v43 }
  0xe0   : > { %v461_v48 = vadd.f32 %v740_v40, %v460_v46 }
  0xe2   : > { %v465_v51 = vsel %vm464_vm3, %v740_v40, %v461_v48 }
  0xe3   : > { %v470_v52 = vsel %vm467_vm4, %v469_v49, %v465_v51 }
  0xe4   : > { %v471_v54 = vmul.f32 %v470_v52, %v446_v50 }
  0xe6   : > { %v646_v56 = vclamps-f32 %v471_v54, 1.0 }
  0xe8   : > { %v474_v59 = vadd.f32 1.0, %v646_v56 }
  0xea   : > { %v475_v60 = vmul.f32 %v474_v59, %v432_v58 }
  0xec   : > { %v476_v61 = vmul.f32 %v475_v60, %v425_v57 }
  0xee   : > { %477 = vst.msk [vmem:[%s342_s12] sm:$0xff] %vm355_vm0, %v476_v61 }
  0xef   : > { %858 = shalt.err (!%p855_p13)
}
  0xf0   : > { %661 = dma.vmem_to_hbm [thread:$0]  (%p1028_p0), %s493_s13, 128, %s495_s21, %s479_s15  }
  0xf1 PF: > { %s506_s16 = sand.u32 1, %s897_s18   ;;  %p675_p2 = pnand %p636_p6, %p1035_p5 }
  0xf2   : > { %s507_s8 = scalar_lea.sflag [#allocation6], %s506_s16 }
  0xf3   : > { %p676_p4 = pneg %p675_p2 }
  0xf5   : > { %892 = dma.done.wait (%p676_p4), %s507_s8, 128  }
  0xf6   : > { %894 = vsyncadd (%p676_p4), %s507_s8, 4294967168  ;;  %s22_s23 = sadd.s32 1, %s917_s23   ;;  %s1126_s18 = smov %s901_s19 }
  0xf7   : > { %p19_p7 = scmp.ge.s32.totalorder %s22_s23, 4   ;;  %s1127_s19 = smov %s905_s20 }
  0xf8   : > { %s1128_s20 = smov %s1033_s28  ;;  %s1129_s21 = smov %s913_s22 }
  0xf9   : > { %s1130_s22 = smov %s1132_s14  ;;  %21 = sbr.rel (!%p19_p7) target bundleno = 7 (0x7), region = 109 }
  0xfe   :  { %513 = vsyncpa [#allocation5], 1 }
  0xff   :  { %515 = vsyncpa [#allocation5 + $0x1], 1 }
 0x100   :  { %516 = vsyncpa [#allocation8], 1 }
 0x101   :  { %517 = vsyncpa [#allocation6], 1 }
 0x102   :  { %519 = vsyncpa [#allocation6 + $0x1], 1 }

</bundles_post_ra>
